<compile_context>
chip_gen: v6e
topology: v6e:2x2x1
jax: 0.10.0
libtpu: 0.0.40
codegen_flags: <defaults>
</compile_context>

<pallas_src>
import math

import jax
import jax.numpy as jnp
from jax.experimental import pallas as pl
from jax.experimental.pallas import tpu as pltpu


# ----------------------------------------------------------------------------
# Hardware-aware configuration
# ----------------------------------------------------------------------------

_MiB = 1024 * 1024
# Conservative fallback: in + out, each double-buffered ~= 4x per-buffer
# (= 12 MiB) fits under every generation's *default* scoped-VMEM limit
# (v5e 16 MiB) even when the hardware query below is unavailable.
_SAFE_PER_BUFFER = 3 * _MiB
_MAX_LANES = 8192            # widest lane-dense slab considered (32 KiB/row f32)


def _hw_config():
    """Return (per_buffer_bytes, vmem_limit_bytes_or_None, min_row_blocks)."""
    per_buffer, vmem_limit, min_blocks = _SAFE_PER_BUFFER, None, 1
    try:
        info = pltpu.get_tpu_info()
        vmem = int(getattr(info, "vmem_capacity_bytes", 0) or 0)
    except Exception:        # query unavailable -> conservative defaults
        vmem = 0
    if vmem >= 96 * _MiB:
        # v5e / v6e class (128 MiB VMEM, 1 TensorCore).  Working set ~24 MiB;
        # explicit 48 MiB limit also covers v5e's 16 MiB default scoped limit.
        per_buffer = 6 * _MiB
        vmem_limit = 48 * _MiB
    elif vmem >= 48 * _MiB:
        # v7x class (64 MiB VMEM per TC, 2 TensorCores).  Working set ~32 MiB.
        per_buffer = 8 * _MiB
        vmem_limit = 48 * _MiB
        min_blocks = 2       # keep >=2 row blocks so both cores stream
    return per_buffer, vmem_limit, min_blocks


def _sublane_multiple(dtype_bytes):
    """Native sublane tile: 8 for f32, 16 for bf16, 32 for int8/fp8."""
    return max(8, 32 // max(1, dtype_bytes))


# ----------------------------------------------------------------------------
# Slab / tiling selection helpers
# ----------------------------------------------------------------------------

def _pick_slab(in_shape, total):
    """Pick (rows, lanes, lane_dense) for a 2-D view of the flattened array."""
    if total >= 128:
        start = min(_MAX_LANES, (total // 128) * 128)
        for lanes in range(start, 127, -128):
            if total % lanes == 0:
                return total // lanes, lanes, True
    # Ragged total (no multiple-of-128 divisor, e.g. 2x784): natural
    # (batch, features) view; lane tiling handled in _build.
    if len(in_shape) >= 2 and in_shape[0] > 0:
        return in_shape[0], total // in_shape[0], False
    return 1, total, False


def _pick_block_rows(rows, lane_block, dtype_bytes, per_buffer, sub,
                     min_blocks, override=None):
    """Rows per block: multiple of the dtype sublane tile, VMEM-budgeted."""
    if override is not None:
        tm = max(sub, ((int(override) + sub - 1) // sub) * sub)  # validate/round
        return min(tm, rows)
    tm = per_buffer // max(1, lane_block * dtype_bytes)
    tm = max(sub, (tm // sub) * sub)
    # v7x megacore: keep >= min_blocks row blocks when the array is big enough.
    if min_blocks > 1 and rows >= min_blocks * sub:
        tm = min(tm, max(sub, ((rows // min_blocks) // sub) * sub))
    if tm >= rows:
        return rows          # single full-extent block is always legal
    # Prefer a tm that divides rows (no masked partial tail block), but never
    # shrink the tile by more than ~2x for it.
    lo = max(sub, ((tm // 2) // sub) * sub)
    cand = tm
    while cand >= lo:
        if rows % cand == 0:
            return cand
        cand -= sub
    return tm


def _blk_rows(i):                 # module-level: stable identity for jit cache
    return (i, 0)


def _blk_rows_lanes(i, j):
    return (i, j)


def _resolve_view_shape(view_shape, total):
    """Resolve a torch-style view shape that may contain a single -1."""
    shape = list(view_shape)
    neg = [i for i, s in enumerate(shape) if s == -1]
    if len(neg) > 1:
        raise ValueError(f"view shape {tuple(view_shape)} has more than one -1")
    known = math.prod(s for s in shape if s != -1)
    if neg:
        if known == 0 or total % known != 0:
            raise ValueError(f"cannot view {total} elements as {tuple(view_shape)}")
        shape[neg[0]] = total // known
    elif known != total:
        raise ValueError(f"cannot view {total} elements as {tuple(view_shape)}")
    return tuple(shape)


# ----------------------------------------------------------------------------
# Kernel
# ----------------------------------------------------------------------------

def _make_elementwise_kernel(func):
    def kernel(x_ref, o_ref):
        # Result cast back to the input dtype (documented behaviour).
        o_ref[...] = func(x_ref[...]).astype(o_ref.dtype)
    return kernel


# ----------------------------------------------------------------------------
# PallasLambda: analogue of torch Lambda(func)
# ----------------------------------------------------------------------------

class PallasLambda:
    """Pallas analogue of torch `Lambda(func)`.

    elementwise_func : jnp-traceable, shape-preserving elementwise function
                       executed inside the Pallas kernel.  None => identity.
    view_shape       : optional torch-.view()-style output shape (may contain
                       one -1); applied as a metadata-only reshape.
    block_rows       : optional override of rows-per-block (testing / tuning).
    per_buffer_bytes : optional override of the per-buffer VMEM tile budget
                       (testing / tuning).
    """

    def __init__(self, elementwise_func=None, view_shape=None,
                 block_rows=None, per_buffer_bytes=None):
        self.elementwise_func = elementwise_func
        self.view_shape = view_shape
        self.block_rows = block_rows
        self.per_buffer_bytes = per_buffer_bytes
        self._cache = {}   # (in_shape, dtype) -> jitted runner

    # -- compiled-path builder -------------------------------------------------
    def _build(self, in_shape, dtype):
        total = math.prod(in_shape)
        dtype_bytes = jnp.dtype(dtype).itemsize
        sub = _sublane_multiple(dtype_bytes)
        per_buffer, vmem_limit, min_blocks = _hw_config()
        if self.per_buffer_bytes is not None:
            per_buffer = int(self.per_buffer_bytes)

        rows, lanes, _lane_dense = _pick_slab(in_shape, total)

        # Lane blocking: normally the full lane extent; only a ragged/huge
        # minor dim needs lane tiling (multiple-of-128 block width, masked
        # tail stores, but bounded VMEM and restored pipelining).
        if lanes <= 128 or sub * lanes * dtype_bytes <= per_buffer:
            lane_block = lanes
        else:
            lane_block = max(128, (per_buffer // (sub * dtype_bytes) // 128) * 128)
            lane_block = min(lane_block, lanes)

        tm = _pick_block_rows(rows, lane_block, dtype_bytes, per_buffer, sub,
                              min_blocks, self.block_rows)

        grid_rows = pl.cdiv(rows, tm)
        grid_lanes = pl.cdiv(lanes, lane_block)

        if grid_lanes == 1:
            grid = (grid_rows,)
            spec = pl.BlockSpec((tm, lanes), _blk_rows)
            dim_sem = ("parallel",)
        else:
            grid = (grid_rows, grid_lanes)
            spec = pl.BlockSpec((tm, lane_block), _blk_rows_lanes)
            dim_sem = ("parallel", "parallel")

        cp_kwargs = dict(dimension_semantics=dim_sem)
        if vmem_limit is not None:
            cp_kwargs["vmem_limit_bytes"] = int(vmem_limit)

        call = pl.pallas_call(
            _make_elementwise_kernel(self.elementwise_func),
            out_shape=jax.ShapeDtypeStruct((rows, lanes), dtype),
            grid=grid,
            in_specs=[spec],
            out_specs=spec,
            compiler_params=pltpu.CompilerParams(**cp_kwargs),
            # Pure HBM-streaming op: read + write the whole array once.
            cost_estimate=pl.CostEstimate(
                flops=total, transcendentals=0,
                bytes_accessed=2 * total * dtype_bytes),
        )

        if self.view_shape is not None:
            out_shape = _resolve_view_shape(self.view_shape, total)
        else:
            out_shape = tuple(in_shape)

        def run(x):
            # reshape in / out is contiguous (torch .view semantics) -> free.
            y = call(jnp.reshape(x, (rows, lanes)))
            return jnp.reshape(y, out_shape)

        return jax.jit(run)

    # -- forward ---------------------------------------------------------------
    def __call__(self, x):
        if self.elementwise_func is None:
            # Pure .view() Lambda: metadata-only reshape, no kernel, no HBM
            # round trip.
            if self.view_shape is not None:
                return jnp.reshape(
                    x, _resolve_view_shape(self.view_shape, x.size))
            return x

        key = (tuple(x.shape), str(x.dtype))
        fn = self._cache.get(key)
        if fn is None:
            fn = self._build(tuple(x.shape), x.dtype)
            self._cache[key] = fn
        return fn(x)
        # TODO(synk): a fully general torch lambda (arbitrary Python code) has
        # no generic Pallas lowering; only jnp-traceable elementwise funcs are
        # executed in-kernel, view-style lambdas are handled as reshapes.


# ----------------------------------------------------------------------------
# Self-test
# ----------------------------------------------------------------------------

if __name__ == "__main__":
    key = jax.random.PRNGKey(0)

    # --- Lambda(preprocess): x.view(-1, 1, H, W) -> pure view, kernel bypassed
    B, H, W = 2, 16, 16
    x_flat = jax.random.normal(key, (B, H * W), dtype=jnp.float32)
    preprocess = PallasLambda(view_shape=(-1, 1, H, W))
    y_nchw = jax.block_until_ready(preprocess(x_flat))
    assert y_nchw.shape == (B, 1, H, W)
    assert jnp.array_equal(y_nchw, jnp.reshape(x_flat, (-1, 1, H, W)))

    # --- Lambda(lambda x: x.view(x.size(0), -1)): flatten -> kernel bypassed
    k2 = jax.random.fold_in(key, 1)
    x_nchw = jax.random.normal(k2, (2, 4, 16, 16), dtype=jnp.float32)
    flatten = PallasLambda(view_shape=(x_nchw.shape[0], -1))
    y_flat = jax.block_until_ready(flatten(x_nchw))
    assert y_flat.shape == (2, 4 * 16 * 16)
    assert jnp.array_equal(y_flat, jnp.reshape(x_nchw, (2, -1)))

    # --- Elementwise Lambda on NCHW input (lane-dense kernel path) -----------
    scaled = PallasLambda(elementwise_func=lambda v: v * 2.0 + 1.0)
    y_scaled = jax.block_until_ready(scaled(x_nchw))
    assert y_scaled.shape == x_nchw.shape
    assert jnp.allclose(y_scaled, x_nchw * 2.0 + 1.0)

    # second call: hits the per-(shape,dtype) compiled cache, no retrace
    y_scaled2 = jax.block_until_ready(scaled(x_nchw))
    assert jnp.allclose(y_scaled2, y_scaled)

    # --- Multi-block tiled path (forced small block_rows -> grid > 1) --------
    k3 = jax.random.fold_in(key, 2)
    x_big = jax.random.normal(k3, (64, 2048), dtype=jnp.float32)
    tiled = PallasLambda(elementwise_func=lambda v: v * 0.5 - 1.0, block_rows=8)
    y_big = jax.block_until_ready(tiled(x_big))
    assert jnp.allclose(y_big, x_big * 0.5 - 1.0)

    # same shape with default (hardware-derived) tiling
    auto = PallasLambda(elementwise_func=lambda v: v * 0.5 - 1.0)
    y_auto = jax.block_until_ready(auto(x_big))
    assert jnp.allclose(y_auto, y_big)

    # --- bf16 input: dtype-aware sublane rounding (16-row multiple) ----------
    k4 = jax.random.fold_in(key, 3)
    x_bf16 = jax.random.normal(k4, (64, 512), dtype=jnp.bfloat16)
    bf = PallasLambda(elementwise_func=lambda v: v * 3.0 - 0.5)
    y_bf = jax.block_until_ready(bf(x_bf16))
    assert y_bf.dtype == jnp.bfloat16
    assert jnp.allclose(y_bf.astype(jnp.float32),
                        (x_bf16 * 3.0 - 0.5).astype(jnp.float32),
                        atol=1e-2, rtol=1e-2)

    # --- Ragged lane count (real MNIST 784 features) fallback path -----------
    k5 = jax.random.fold_in(key, 4)
    x_mnist = jax.random.normal(k5, (2, 784), dtype=jnp.float32)
    plus_one = PallasLambda(elementwise_func=lambda v: v + 1.0)
    y_mnist = jax.block_until_ready(plus_one(x_mnist))
    assert jnp.allclose(y_mnist, x_mnist + 1.0)

    # --- Ragged + tiny VMEM budget forces lane tiling (2-D grid, masked tail)
    k6 = jax.random.fold_in(key, 5)
    x_rag = jax.random.normal(k6, (2, 1000), dtype=jnp.float32)
    rag = PallasLambda(elementwise_func=lambda v: v - 2.0, per_buffer_bytes=4096)
    y_rag = jax.block_until_ready(rag(x_rag))
    assert jnp.allclose(y_rag, x_rag - 2.0)

    print("KERNEL_OK")
</pallas_src>

<mosaic_0001>
module attributes {stable_mosaic.version = 11 : i64} {
  func.func @kernel(%arg0: i32, %arg1: memref<1x2048xf32, #tpu.memory_space<vmem>>, %arg2: memref<1x2048xf32, #tpu.memory_space<vmem>>) attributes {dimension_semantics = [#tpu.dimension_semantics<parallel>], iteration_bounds = array<i64: 1>, scalar_prefetch = 0 : i64, scratch_operands = 0 : i64, tpu.core_type = #tpu.core_type<tc>, window_params = [{transform_indices = @transform_0, window_bounds = array<i64: 1, 2048>}, {transform_indices = @transform_1, window_bounds = array<i64: 1, 2048>}]} {
    %c0 = arith.constant 0 : index
    %c0_0 = arith.constant 0 : index
    %0 = vector.load %arg1[%c0, %c0_0] : memref<1x2048xf32, #tpu.memory_space<vmem>>, vector<1x2048xf32>
    %cst = arith.constant 2.000000e+00 : f32
    %1 = vector.broadcast %cst : f32 to vector<1x2048xf32>
    %2 = arith.mulf %0, %1 : vector<1x2048xf32>
    %cst_1 = arith.constant 1.000000e+00 : f32
    %3 = vector.broadcast %cst_1 : f32 to vector<1x2048xf32>
    %4 = arith.addf %2, %3 : vector<1x2048xf32>
    %c0_2 = arith.constant 0 : index
    %c0_3 = arith.constant 0 : index
    %5 = vector.load %arg2[%c0_2, %c0_3] : memref<1x2048xf32, #tpu.memory_space<vmem>>, vector<1x2048xf32>
    tpu.vector_store %arg2[%c0_2, %c0_3], %4 {strides = array<i32>} : memref<1x2048xf32, #tpu.memory_space<vmem>>, vector<1x2048xf32>,
    return
  }
  func.func @transform_0(%arg0: i32) -> (i32, i32) {
    %c0_i32 = arith.constant 0 : i32
    %c0_i32_0 = arith.constant 0 : i32
    return %arg0, %c0_i32 : i32, i32
  }
  func.func @transform_1(%arg0: i32) -> (i32, i32) {
    %c0_i32 = arith.constant 0 : i32
    %c0_i32_0 = arith.constant 0 : i32
    return %arg0, %c0_i32 : i32, i32
  }
}

</mosaic_0001>

<bundles_post_ra>
// kernel: run.1
= control target key start
LH: loop header
LB: loop body
LE: loop exit
PB: predicated region body
PF: predicated region fallthrough
CT: control target
= control target key end

     0   :  { %s42_s0 = inlined_call_operand.vmem [shape: f32[1,2048], index: 0, kind: input, shape index: {}]   ;;  %s43_s1 = inlined_call_operand.vmem [shape: f32[1,2048], index: 1, kind: output, shape index: {}]  }
   0x1   :  { %v8_v0 = vld [vmem:[%s42_s0] sm:$0xff]  ;;  %v9_v1 = vld [vmem:[%s42_s0 + $0x8] sm:$0xff] }
   0x2   :  { %v10_v2 = vmul.f32 2.0, %v8_v0  ;;  %v11_v3 = vmul.f32 2.0, %v9_v1 }
   0x4   :  { %v12_v4 = vadd.f32 1.0, %v10_v2  ;;  %v13_v5 = vadd.f32 1.0, %v11_v3 }
   0x6   :  { %14 = vst [vmem:[%s43_s1] sm:$0xff] %v12_v4  ;;  %15 = vst [vmem:[%s43_s1 + $0x8] sm:$0xff] %v13_v5 }

</bundles_post_ra>
